<compile_context>
chip_gen: v5e
topology: v5e:2x2
jax: 0.10.0
libtpu: 0.0.40
codegen_flags: <defaults>
</compile_context>

<pallas_src>
import jax
import jax.numpy as jnp
from jax.experimental import pallas as pl
from jax.experimental.pallas import tpu as pltpu

_LANE = 128        # lane width (last dim)
_SUBLANE_BF16 = 16  # bf16 sublane tile (second-to-last dim)


def _round_up(a, m):
    return (a + m - 1) // m * m


def _mlp_kernel(x_ref, w1_ref, b1_ref, w2_ref, b2_ref, wh_ref, bh_ref, o_ref):
    """Fused MLP hot path: two (Linear -> ReLU) blocks + head Linear.

    x is read as f32 and cast to bf16 in-register; weights are bf16; matmuls
    accumulate in f32 on the MXU; bias add + ReLU stay in f32 and are
    re-quantized to bf16 exactly once before the next dot (v5e has no bf16
    VPU). Dropout is identity at inference -> not emitted.
    """
    x = x_ref[...].astype(jnp.bfloat16)

    # Block 1: Linear -> ReLU
    h = jnp.dot(x, w1_ref[...], preferred_element_type=jnp.float32) + b1_ref[...]
    h = jnp.maximum(h, 0.0).astype(jnp.bfloat16)

    # Block 2: Linear -> ReLU
    h = jnp.dot(h, w2_ref[...], preferred_element_type=jnp.float32) + b2_ref[...]
    h = jnp.maximum(h, 0.0).astype(jnp.bfloat16)

    # Head: Linear (narrow N = dim_out, unpadded — write only the real bytes)
    out = jnp.dot(h, wh_ref[...], preferred_element_type=jnp.float32) + bh_ref[...]
    o_ref[...] = out.astype(o_ref.dtype)


def prepare_params(params):
    """One-time weight prep: cast to bf16 and zero-pad ONLY the hidden dims
    (which never stream to/from HBM per grid step) to 128 lanes. Call once at
    param-load time, not per forward."""
    F, H1 = params["w1"].shape
    H2 = params["w2"].shape[1]
    O = params["wh"].shape[1]
    H1p = _round_up(H1, _LANE)
    H2p = _round_up(H2, _LANE)

    bf16 = jnp.bfloat16
    w1p = jnp.zeros((F, H1p), bf16).at[:, :H1].set(params["w1"].astype(bf16))
    b1p = jnp.zeros((1, H1p), jnp.float32).at[:, :H1].set(params["b1"])
    w2p = jnp.zeros((H1p, H2p), bf16).at[:H1, :H2].set(params["w2"].astype(bf16))
    b2p = jnp.zeros((1, H2p), jnp.float32).at[:, :H2].set(params["b2"])
    whp = jnp.zeros((H2p, O), bf16).at[:H2, :].set(params["wh"].astype(bf16))
    bhp = params["bh"].astype(jnp.float32)
    return {
        "w1": w1p, "b1": b1p, "w2": w2p, "b2": b2p, "wh": whp, "bh": bhp,
        "dims": (F, H1p, H2p, O),
    }


def mlp_forward(x, prepped, *, block_b=2048):
    """Run the fused MLP Pallas kernel.

    x:       (B, F) float32 (unpadded, uncast — the kernel casts in-register)
    prepped: output of prepare_params()
    Returns: (B, O) float32
    """
    B, F = x.shape
    Fp, H1p, H2p, O = prepped["dims"]
    assert F == Fp, "feature count mismatch with prepared params"

    # --- batch tiling ---------------------------------------------------
    # * multiple of 16 (bf16 sublane tile for the intermediate activations)
    # * capped so the grid has >= 2 steps for B >= 32 (v7x: 2 TensorCores)
    half = _round_up(pl.cdiv(B, 2), _SUBLANE_BF16)
    block_b = max(_SUBLANE_BF16, min(block_b, half))
    B_pad = _round_up(B, block_b)
    if B_pad != B:
        # Padded rows pick up biases through ReLU -> garbage; sliced off below.
        x = jnp.pad(x, ((0, B_pad - B), (0, 0)))
    grid = (B_pad // block_b,)

    def const2d(shape):
        return pl.BlockSpec(shape, lambda i: (0, 0))

    out_padded = pl.pallas_call(
        _mlp_kernel,
        out_shape=jax.ShapeDtypeStruct((B_pad, O), jnp.float32),
        grid_spec=pltpu.PrefetchScalarGridSpec(
            num_scalar_prefetch=0,
            grid=grid,
            in_specs=[
                pl.BlockSpec((block_b, F), lambda i: (i, 0)),  # x tile (f32)
                const2d((F, H1p)),
                const2d((1, H1p)),
                const2d((H1p, H2p)),
                const2d((1, H2p)),
                const2d((H2p, O)),
                const2d((1, O)),
            ],
            out_specs=pl.BlockSpec((block_b, O), lambda i: (i, 0)),
        ),
        compiler_params=pltpu.CompilerParams(
            dimension_semantics=("parallel",),
        ),
    )(x, prepped["w1"], prepped["b1"], prepped["w2"], prepped["b2"],
      prepped["wh"], prepped["bh"])

    return out_padded[:B] if B_pad != B else out_padded


def init_params(key, n_features, hidden_sizes, dim_out):
    """Deterministic init mimicking torch.nn.Linear's uniform(-1/sqrt(fan_in), ...)."""
    dims = [n_features] + list(hidden_sizes) + [dim_out]
    names = ["1", "2", "h"]
    params = {}
    for name, (d_in, d_out) in zip(names, zip(dims[:-1], dims[1:])):
        key, kw, kb = jax.random.split(key, 3)
        bound = 1.0 / jnp.sqrt(d_in)
        params[f"w{name}"] = jax.random.uniform(
            kw, (d_in, d_out), jnp.float32, -bound, bound)
        params[f"b{name}"] = jax.random.uniform(
            kb, (1, d_out), jnp.float32, -bound, bound)
    return params


def mlp_reference(x, params):
    """Pure-JAX reference mirroring the kernel's bf16-weight / f32-accum math."""
    bf16 = jnp.bfloat16
    h = x.astype(bf16)
    h = jnp.dot(h, params["w1"].astype(bf16),
                preferred_element_type=jnp.float32) + params["b1"]
    h = jnp.maximum(h, 0.0).astype(bf16)
    h = jnp.dot(h, params["w2"].astype(bf16),
                preferred_element_type=jnp.float32) + params["b2"]
    h = jnp.maximum(h, 0.0).astype(bf16)
    return jnp.dot(h, params["wh"].astype(bf16),
                   preferred_element_type=jnp.float32) + params["bh"]


if __name__ == "__main__":
    n_features = 16
    hidden_sizes = (32, 32)   # backbone_config.out_features_per_layer
    dim_out = 4               # head_config.dim_out
    batch = 256               # small but enough for a 2-step grid (v7x: 2 TCs)

    key = jax.random.PRNGKey(0)
    key, kx = jax.random.split(key)
    x = jax.random.normal(kx, (batch, n_features), jnp.float32)

    params = init_params(key, n_features, hidden_sizes, dim_out)
    prepped = prepare_params(params)   # one-time pad/cast, outside the hot path

    # Column selection (no embedding configs -> passthrough of all columns,
    # i.e. identity permutation). Kept as plain-JAX glue, matching
    # `x[:, cat + num + passthrough]` in the torch forward.
    col_idxs = jnp.arange(n_features)
    x_sel = x[:, col_idxs]

    out = mlp_forward(x_sel, prepped)   # block_b auto-caps to 128 here -> grid=(2,)
    out = jax.block_until_ready(out)

    ref = mlp_reference(x_sel, params)
    assert out.shape == (batch, dim_out)
    assert jnp.allclose(out, ref, atol=1e-3, rtol=1e-3), (
        float(jnp.max(jnp.abs(out - ref))))

    print("KERNEL_OK")
</pallas_src>

<mosaic_0001>
module attributes {stable_mosaic.version = 11 : i64} {
  func.func @_mlp_kernel(%arg0: i32, %arg1: memref<128x16xf32, #tpu.memory_space<vmem>>, %arg2: memref<16x128xbf16, #tpu.memory_space<vmem>>, %arg3: memref<1x128xf32, #tpu.memory_space<vmem>>, %arg4: memref<128x128xbf16, #tpu.memory_space<vmem>>, %arg5: memref<1x128xf32, #tpu.memory_space<vmem>>, %arg6: memref<128x4xbf16, #tpu.memory_space<vmem>>, %arg7: memref<1x4xf32, #tpu.memory_space<vmem>>, %arg8: memref<128x4xf32, #tpu.memory_space<vmem>>) attributes {dimension_semantics = [#tpu.dimension_semantics<parallel>], iteration_bounds = array<i64: 2>, scalar_prefetch = 0 : i64, scratch_operands = 0 : i64, tpu.core_type = #tpu.core_type<tc>, window_params = [{transform_indices = @transform_0, window_bounds = array<i64: 128, 16>}, {pipeline_mode = #tpu.pipeline_mode<synchronous>, transform_indices = @transform_1, window_bounds = array<i64: 16, 128>}, {pipeline_mode = #tpu.pipeline_mode<synchronous>, transform_indices = @transform_2, window_bounds = array<i64: 1, 128>}, {pipeline_mode = #tpu.pipeline_mode<synchronous>, transform_indices = @transform_3, window_bounds = array<i64: 128, 128>}, {pipeline_mode = #tpu.pipeline_mode<synchronous>, transform_indices = @transform_4, window_bounds = array<i64: 1, 128>}, {pipeline_mode = #tpu.pipeline_mode<synchronous>, transform_indices = @transform_5, window_bounds = array<i64: 128, 4>}, {pipeline_mode = #tpu.pipeline_mode<synchronous>, transform_indices = @transform_6, window_bounds = array<i64: 1, 4>}, {transform_indices = @transform_7, window_bounds = array<i64: 128, 4>}]} {
    %c0 = arith.constant 0 : index
    %c0_0 = arith.constant 0 : index
    %0 = vector.load %arg1[%c0, %c0_0] : memref<128x16xf32, #tpu.memory_space<vmem>>, vector<128x16xf32>
    %1 = arith.truncf %0 : vector<128x16xf32> to vector<128x16xbf16>
    %c0_1 = arith.constant 0 : index
    %c0_2 = arith.constant 0 : index
    %2 = vector.load %arg2[%c0_1, %c0_2] : memref<16x128xbf16, #tpu.memory_space<vmem>>, vector<16x128xbf16>
    %cst = arith.constant dense<0.000000e+00> : vector<128x128xf32>
    %3 = tpu.matmul %1, %2, %cst {dimension_numbers = #tpu.dot_dimension_numbers<[1], [0], [0], [1], [0, 0, 1, 1], [], []>} : vector<128x16xbf16>, vector<16x128xbf16>, vector<128x128xf32> -> vector<128x128xf32>
    %c0_3 = arith.constant 0 : index
    %c0_4 = arith.constant 0 : index
    %4 = vector.load %arg3[%c0_3, %c0_4] : memref<1x128xf32, #tpu.memory_space<vmem>>, vector<1x128xf32>
    %5 = vector.broadcast %4 : vector<1x128xf32> to vector<128x128xf32>
    %6 = arith.addf %3, %5 : vector<128x128xf32>
    %cst_5 = arith.constant 0.000000e+00 : f32
    %7 = vector.broadcast %cst_5 : f32 to vector<128x128xf32>
    %8 = arith.maximumf %6, %7 : vector<128x128xf32>
    %9 = arith.truncf %8 : vector<128x128xf32> to vector<128x128xbf16>
    %c0_6 = arith.constant 0 : index
    %c0_7 = arith.constant 0 : index
    %10 = vector.load %arg4[%c0_6, %c0_7] : memref<128x128xbf16, #tpu.memory_space<vmem>>, vector<128x128xbf16>
    %cst_8 = arith.constant dense<0.000000e+00> : vector<128x128xf32>
    %11 = tpu.matmul %9, %10, %cst_8 {dimension_numbers = #tpu.dot_dimension_numbers<[1], [0], [0], [1], [0, 0, 1, 1], [], []>} : vector<128x128xbf16>, vector<128x128xbf16>, vector<128x128xf32> -> vector<128x128xf32>
    %c0_9 = arith.constant 0 : index
    %c0_10 = arith.constant 0 : index
    %12 = vector.load %arg5[%c0_9, %c0_10] : memref<1x128xf32, #tpu.memory_space<vmem>>, vector<1x128xf32>
    %13 = vector.broadcast %12 : vector<1x128xf32> to vector<128x128xf32>
    %14 = arith.addf %11, %13 : vector<128x128xf32>
    %cst_11 = arith.constant 0.000000e+00 : f32
    %15 = vector.broadcast %cst_11 : f32 to vector<128x128xf32>
    %16 = arith.maximumf %14, %15 : vector<128x128xf32>
    %17 = arith.truncf %16 : vector<128x128xf32> to vector<128x128xbf16>
    %c0_12 = arith.constant 0 : index
    %c0_13 = arith.constant 0 : index
    %18 = vector.load %arg6[%c0_12, %c0_13] : memref<128x4xbf16, #tpu.memory_space<vmem>>, vector<128x4xbf16>
    %cst_14 = arith.constant dense<0.000000e+00> : vector<128x4xf32>
    %19 = tpu.matmul %17, %18, %cst_14 {dimension_numbers = #tpu.dot_dimension_numbers<[1], [0], [0], [1], [0, 0, 1, 1], [], []>} : vector<128x128xbf16>, vector<128x4xbf16>, vector<128x4xf32> -> vector<128x4xf32>
    %c0_15 = arith.constant 0 : index
    %c0_16 = arith.constant 0 : index
    %20 = vector.load %arg7[%c0_15, %c0_16] : memref<1x4xf32, #tpu.memory_space<vmem>>, vector<1x4xf32>
    %21 = vector.broadcast %20 : vector<1x4xf32> to vector<128x4xf32>
    %22 = arith.addf %19, %21 : vector<128x4xf32>
    %c0_17 = arith.constant 0 : index
    %c0_18 = arith.constant 0 : index
    %23 = vector.load %arg8[%c0_17, %c0_18] : memref<128x4xf32, #tpu.memory_space<vmem>>, vector<128x4xf32>
    tpu.vector_store %arg8[%c0_17, %c0_18], %22 {strides = array<i32>} : memref<128x4xf32, #tpu.memory_space<vmem>>, vector<128x4xf32>,
    return
  }
  func.func @transform_0(%arg0: i32) -> (i32, i32) {
    %c0_i32 = arith.constant 0 : i32
    %c0_i32_0 = arith.constant 0 : i32
    return %arg0, %c0_i32 : i32, i32
  }
  func.func @transform_1(%arg0: i32) -> (i32, i32) {
    %c0_i32 = arith.constant 0 : i32
    %c0_i32_0 = arith.constant 0 : i32
    %c0_i32_1 = arith.constant 0 : i32
    return %c0_i32, %c0_i32_0 : i32, i32
  }
  func.func @transform_2(%arg0: i32) -> (i32, i32) {
    %c0_i32 = arith.constant 0 : i32
    %c0_i32_0 = arith.constant 0 : i32
    %c0_i32_1 = arith.constant 0 : i32
    return %c0_i32, %c0_i32_0 : i32, i32
  }
  func.func @transform_3(%arg0: i32) -> (i32, i32) {
    %c0_i32 = arith.constant 0 : i32
    %c0_i32_0 = arith.constant 0 : i32
    %c0_i32_1 = arith.constant 0 : i32
    return %c0_i32, %c0_i32_0 : i32, i32
  }
  func.func @transform_4(%arg0: i32) -> (i32, i32) {
    %c0_i32 = arith.constant 0 : i32
    %c0_i32_0 = arith.constant 0 : i32
    %c0_i32_1 = arith.constant 0 : i32
    return %c0_i32, %c0_i32_0 : i32, i32
  }
  func.func @transform_5(%arg0: i32) -> (i32, i32) {
    %c0_i32 = arith.constant 0 : i32
    %c0_i32_0 = arith.constant 0 : i32
    %c0_i32_1 = arith.constant 0 : i32
    return %c0_i32, %c0_i32_0 : i32, i32
  }
  func.func @transform_6(%arg0: i32) -> (i32, i32) {
    %c0_i32 = arith.constant 0 : i32
    %c0_i32_0 = arith.constant 0 : i32
    %c0_i32_1 = arith.constant 0 : i32
    return %c0_i32, %c0_i32_0 : i32, i32
  }
  func.func @transform_7(%arg0: i32) -> (i32, i32) {
    %c0_i32 = arith.constant 0 : i32
    %c0_i32_0 = arith.constant 0 : i32
    return %arg0, %c0_i32 : i32, i32
  }
}

</mosaic_0001>

<bundles_post_ra>
// kernel: tpu_custom_call.1
= control target key start
LH: loop header
LB: loop body
LE: loop exit
PB: predicated region body
PF: predicated region fallthrough
CT: control target
= control target key end

     0   :  { %s927_s24 = smov 0   ;;  %s1089_s0 = inlined_call_operand.vmem [shape: f32[256,16], index: 0, kind: input, shape index: {}]   ;;  %s1090_s1 = inlined_call_operand.vmem [shape: bf16[16,128], index: 1, kind: input, shape index: {}]   ;;  %s1091_s2 = inlined_call_operand.vmem [shape: f32[1,128], index: 2, kind: input, shape index: {}]   ;;  %s1092_s3 = inlined_call_operand.vmem [shape: bf16[128,128], index: 3, kind: input, shape index: {}]   ;;  %s1093_s4 = inlined_call_operand.vmem [shape: f32[1,128], index: 4, kind: input, shape index: {}]   ;;  %s1094_s5 = inlined_call_operand.vmem [shape: bf16[128,4], index: 5, kind: input, shape index: {}]   ;;  %s1095_s6 = inlined_call_operand.vmem [shape: f32[1,4], index: 6, kind: input, shape index: {}]   ;;  %s1096_s7 = inlined_call_operand.vmem [shape: f32[256,4], index: 7, kind: output, shape index: {}]  }
   0x1 LB: > { %s748_s25 = sadd.s32 4294967295, %s885_s24   ;;  %p752_p0 = scmp.ge.s32.totalorder %s885_s24, 1  ;;  %s885_s24 = sphi %s927_s24, %s17_s24  }
   0x2   : > { %p238_p1 = scmp.lt.s32.totalorder %s885_s24, 3 }
   0x4   : > { %p239_p2 = pnand %p752_p0, %p238_p1 }
   0x5   : > { %s753_s28 = sshll.u32 (!%p239_p2), %s748_s25, 4 }
   0x6   : > { %242 = sbr.rel (%p239_p2) target bundleno = 558 (0x22e), region = 48  ;;  %p271_p3 = scmp.lt.s32.totalorder (!%p239_p2), %s753_s28, 31 }
   0xb   : > { %v835_v0 = vld [vmem:[%s1090_s1] sm:$0xff]  ;;  %s1098_s28 = smov (!%p271_p3, %s753_s28), 31  ;;  %vm319_vm0 = vcmask 130048   ;;  %v843_v16 = vld [vmem:[%s1092_s3 + $0x38] sm:$0xff]  ;;  %v842_v20 = vld [vmem:[%s1092_s3 + $0x30] sm:$0xff]  ;;  %vm675_vm1 = vcmask 31744  }
   0xc   : > { %351 = vmatpush.bf16.msra.mxu0 %v835_v0  ;;  %s754_s29 = sshll.u32 %s1098_s28, 3  ;;  %485 = vmatpush.bf16.msra.mxu1 %v843_v16  ;;  %v841_v21 = vld [vmem:[%s1092_s3 + $0x28] sm:$0xff]  ;;  %v840_v22 = vld [vmem:[%s1092_s3 + $0x20] sm:$0xff]  ;;  %v839_v25 = vld [vmem:[%s1092_s3 + $0x18] sm:$0xff] }
   0xd   : > { %s946_s9 = scalar_lea.vmem %s1089_s0, %s754_s29  ;;  %852 = vmatpush.bf16.msra.mxu3 %v843_v16  ;;  %v838_v27 = vld [vmem:[%s1092_s3 + $0x10] sm:$0xff]  ;;  %v837_v28 = vld [vmem:[%s1092_s3 + $0x8] sm:$0xff]  ;;  %v836_v29 = vld [vmem:[%s1092_s3] sm:$0xff]  ;;  %s1052_s10 = scalar_lea.vmem %s1096_s7, %s754_s29 }
   0xe   : > { %v283_v1 = vld [vmem:[%s946_s9] sm:$0xff]  ;;  %v284_v2 = vld [vmem:[%s946_s9 + $0x8] sm:$0xff]  ;;  %v285_v4 = vld [vmem:[%s946_s9 + $0x10] sm:$0xff] }
   0xf   : > { %v299_v3 = vpack.c.bf16 %v284_v2, %v283_v1  ;;  %v286_v5 = vld [vmem:[%s946_s9 + $0x18] sm:$0xff]  ;;  %v287_v7 = vld [vmem:[%s946_s9 + $0x20] sm:$0xff]  ;;  %v288_v8 = vld [vmem:[%s946_s9 + $0x28] sm:$0xff] }
  0x10   : > { %v300_v6 = vpack.c.bf16 %v286_v5, %v285_v4  ;;  %v301_v9 = vpack.c.bf16 %v288_v8, %v287_v7  ;;  %v289_v10 = vld [vmem:[%s946_s9 + $0x30] sm:$0xff]  ;;  %v290_v11 = vld [vmem:[%s946_s9 + $0x38] sm:$0xff]  ;;  %v291_v13 = vld [vmem:[%s946_s9 + $0x40] sm:$0xff]  ;;  %486 = vmatpush.bf16.msra.mxu1 %v842_v20 }
  0x11   : > { %761 = vmatmul.msk.bf16.vlgmr.msra.gmra.mxu0 %vm319_vm0, %v299_v3  ;;  %v302_v12 = vpack.c.bf16 %v290_v11, %v289_v10  ;;  %v292_v14 = vld [vmem:[%s946_s9 + $0x48] sm:$0xff]  ;;  %v293_v17 = vld [vmem:[%s946_s9 + $0x50] sm:$0xff]  ;;  %v294_v18 = vld [vmem:[%s946_s9 + $0x58] sm:$0xff]  ;;  %853 = vmatpush.bf16.msra.mxu3 %v842_v20 }
  0x12   : > { %v303_v15 = vpack.c.bf16 %v292_v14, %v291_v13  ;;  %v304_v19 = vpack.c.bf16 %v294_v18, %v293_v17  ;;  %v295_v23 = vld [vmem:[%s946_s9 + $0x60] sm:$0xff]  ;;  %v296_v24 = vld [vmem:[%s946_s9 + $0x68] sm:$0xff]  ;;  %v297_v30 = vld [vmem:[%s946_s9 + $0x70] sm:$0xff] }
  0x13   : > { %v305_v26 = vpack.c.bf16 %v296_v24, %v295_v23  ;;  %v298_v31 = vld [vmem:[%s946_s9 + $0x78] sm:$0xff]  ;;  %v999_v34 = vld [vmem:[%s1091_s2] ss:$0 sm:$0xff]  ;;  %v850_v13 = vld [vmem:[%s1094_s5 + $0x30] sm:$0xff] }
  0x14   : > { %487 = vmatpush.bf16.msra.mxu1 %v841_v21  ;;  %v306_v32 = vpack.c.bf16 %v298_v31, %v297_v30  ;;  %v848_v16 = vld [vmem:[%s1094_s5 + $0x20] sm:$0xff]  ;;  %v847_v20 = vld [vmem:[%s1094_s5 + $0x18] sm:$0xff]  ;;  %v846_v24 = vld [vmem:[%s1094_s5 + $0x10] sm:$0xff] }
  0x15   : > { %854 = vmatpush.bf16.msra.mxu3 %v841_v21 }
  0x18   : > { %488 = vmatpush.bf16.msra.mxu1 %v840_v22 }
  0x19   : > { %855 = vmatpush.bf16.msra.mxu3 %v840_v22 }
  0x1c   : > { %489 = vmatpush.bf16.msra.mxu1 %v839_v25 }
  0x1d   : > { %856 = vmatpush.bf16.msra.mxu3 %v839_v25 }
  0x20   : > { %490 = vmatpush.bf16.msra.mxu1 %v838_v27 }
  0x21   : > { %762 = vmatmul.msk.bf16.gmra.mxu0 %vm319_vm0, %v300_v6  ;;  %857 = vmatpush.bf16.msra.mxu3 %v838_v27  ;;  %v844_v27 = vld [vmem:[%s1094_s5] sm:$0xff] }
  0x24   : > { %491 = vmatpush.bf16.msra.mxu1 %v837_v28 }
  0x25   : > { %858 = vmatpush.bf16.msra.mxu3 %v837_v28 }
  0x28   : > { %492 = vmatpush.bf16.msra.mxu1 %v836_v29 }
  0x29   : > { %859 = vmatpush.bf16.msra.mxu3 %v836_v29 }
  0x31   : > { %763 = vmatmul.msk.bf16.gmra.mxu0 %vm319_vm0, %v301_v9  ;;  %v851_v9 = vld [vmem:[%s1094_s5 + $0x38] sm:$0xff] }
  0x32   : > { %626 = vmatpush.bf16.msra.mxu2 %v851_v9  ;;  %860 = vmatpush.bf16.msrb.mxu3 %v851_v9 }
  0x36   : > { %627 = vmatpush.bf16.msra.mxu2 %v850_v13  ;;  %861 = vmatpush.bf16.msrb.mxu3 %v850_v13 }
  0x41   : > { %764 = vmatmul.msk.bf16.gmra.mxu0 %vm319_vm0, %v302_v12 }
  0x51   : > { %765 = vmatmul.msk.bf16.gmra.mxu0 %vm319_vm0, %v303_v15  ;;  %v849_v15 = vld [vmem:[%s1094_s5 + $0x28] sm:$0xff] }
  0x52   : > { %628 = vmatpush.bf16.msra.mxu2 %v849_v15  ;;  %862 = vmatpush.bf16.msrb.mxu3 %v849_v15 }
  0x56   : > { %629 = vmatpush.bf16.msra.mxu2 %v848_v16  ;;  %863 = vmatpush.bf16.msrb.mxu3 %v848_v16 }
  0x5a   : > { %630 = vmatpush.bf16.msra.mxu2 %v847_v20  ;;  %864 = vmatpush.bf16.msrb.mxu3 %v847_v20 }
  0x5e   : > { %631 = vmatpush.bf16.msra.mxu2 %v846_v24  ;;  %865 = vmatpush.bf16.msrb.mxu3 %v846_v24 }
  0x61   : > { %766 = vmatmul.msk.bf16.gmra.mxu0 %vm319_vm0, %v304_v19 }
  0x71   : > { %767 = vmatmul.msk.bf16.gmra.mxu0 %vm319_vm0, %v305_v26  ;;  %v845_v26 = vld [vmem:[%s1094_s5 + $0x8] sm:$0xff] }
  0x72   : > { %632 = vmatpush.bf16.msra.mxu2 %v845_v26  ;;  %866 = vmatpush.bf16.msrb.mxu3 %v845_v26 }
  0x76   : > { %633 = vmatpush.bf16.msra.mxu2 %v844_v27  ;;  %867 = vmatpush.bf16.msrb.mxu3 %v844_v27  ;;  %v878_v27 = vld [vmem:[%s1095_s6] ss:$0 sm:$0xff] }
  0x81   : > { %768 = vmatmul.msk.bf16.gmra.mxu0 %vm319_vm0, %v306_v32 }
  0x8e   : > { %v353_v33 = vpop.f32.mrf.mxu0 }
  0x8f   : > { %v354_v35 = vadd.f32 %v999_v34, %v353_v33 }
  0x91   : > { %v393_v38 = vmax.f32 %v354_v35, 0.0 }
  0x96   : > { %v355_v36 = vpop.f32.mrf.mxu0 }
  0x97   : > { %v356_v37 = vadd.f32 %v999_v34, %v355_v36  ;;  %v877_v36 = vld [vmem:[%s1093_s4] ss:$0 sm:$0xff] }
  0x99   : > { %v394_v39 = vmax.f32 %v356_v37, 0.0 }
  0x9b   : > { %v409_v40 = vpack.c.bf16 %v394_v39, %v393_v38 }
  0x9d   : > { %493 = vmatmul.bf16.vlgmr.msra.gmra.mxu1 %v409_v40 }
  0x9e   : > { %v358_v41 = vpop.f32.mrf.mxu0 }
  0x9f   : > { %v359_v42 = vadd.f32 %v999_v34, %v358_v41 }
  0xa1   : > { %v395_v45 = vmax.f32 %v359_v42, 0.0 }
  0xa6   : > { %v360_v43 = vpop.f32.mrf.mxu0 }
  0xa7   : > { %v361_v44 = vadd.f32 %v999_v34, %v360_v43 }
  0xa9   : > { %v396_v46 = vmax.f32 %v361_v44, 0.0 }
  0xab   : > { %v410_v47 = vpack.c.bf16 %v396_v46, %v395_v45 }
  0xad   : > { %498 = vmatmul.bf16.gmra.mxu1 %v410_v47 }
  0xae   : > { %v363_v48 = vpop.f32.mrf.mxu0 }
  0xaf   : > { %v364_v49 = vadd.f32 %v999_v34, %v363_v48 }
  0xb1   : > { %v397_v52 = vmax.f32 %v364_v49, 0.0 }
  0xb6   : > { %v365_v50 = vpop.f32.mrf.mxu0 }
  0xb7   : > { %v366_v51 = vadd.f32 %v999_v34, %v365_v50 }
  0xb9   : > { %v398_v53 = vmax.f32 %v366_v51, 0.0 }
  0xbb   : > { %v411_v54 = vpack.c.bf16 %v398_v53, %v397_v52 }
  0xbd   : > { %503 = vmatmul.bf16.gmra.mxu1 %v411_v54 }
  0xbe   : > { %v368_v55 = vpop.f32.mrf.mxu0 }
  0xbf   : > { %v369_v56 = vadd.f32 %v999_v34, %v368_v55 }
  0xc1   : > { %v399_v59 = vmax.f32 %v369_v56, 0.0 }
  0xc6   : > { %v370_v57 = vpop.f32.mrf.mxu0 }
  0xc7   : > { %v371_v58 = vadd.f32 %v999_v34, %v370_v57 }
  0xc9   : > { %v400_v60 = vmax.f32 %v371_v58, 0.0 }
  0xcb   : > { %v412_v61 = vpack.c.bf16 %v400_v60, %v399_v59 }
  0xcd   : > { %508 = vmatmul.bf16.gmra.mxu1 %v412_v61 }
  0xce   : > { %v373_v62 = vpop.f32.mrf.mxu0 }
  0xcf   : > { %v374_v63 = vadd.f32 %v999_v34, %v373_v62 }
  0xd1   : > { %v401_v2 = vmax.f32 %v374_v63, 0.0 }
  0xd6   : > { %v375_v0 = vpop.f32.mrf.mxu0 }
  0xd7   : > { %v376_v1 = vadd.f32 %v999_v34, %v375_v0 }
  0xd9   : > { %v402_v3 = vmax.f32 %v376_v1, 0.0 }
  0xdb   : > { %v413_v4 = vpack.c.bf16 %v402_v3, %v401_v2 }
  0xdd   : > { %513 = vmatmul.bf16.gmra.mxu1 %v413_v4 }
  0xde   : > { %v378_v5 = vpop.f32.mrf.mxu0 }
  0xdf   : > { %v379_v6 = vadd.f32 %v999_v34, %v378_v5 }
  0xe1   : > { %v403_v10 = vmax.f32 %v379_v6, 0.0 }
  0xe6   : > { %v380_v7 = vpop.f32.mrf.mxu0 }
  0xe7   : > { %v381_v8 = vadd.f32 %v999_v34, %v380_v7 }
  0xe9   : > { %v404_v11 = vmax.f32 %v381_v8, 0.0 }
  0xeb   : > { %v414_v12 = vpack.c.bf16 %v404_v11, %v403_v10 }
  0xed   : > { %518 = vmatmul.bf16.gmra.mxu1 %v414_v12 }
  0xee   : > { %v383_v14 = vpop.f32.mrf.mxu0 }
  0xef   : > { %v384_v17 = vadd.f32 %v999_v34, %v383_v14 }
  0xf1   : > { %v405_v21 = vmax.f32 %v384_v17, 0.0 }
  0xf6   : > { %v385_v18 = vpop.f32.mrf.mxu0 }
  0xf7   : > { %v386_v19 = vadd.f32 %v999_v34, %v385_v18 }
  0xf9   : > { %v406_v22 = vmax.f32 %v386_v19, 0.0 }
  0xfb   : > { %v415_v23 = vpack.c.bf16 %v406_v22, %v405_v21 }
  0xfd   : > { %523 = vmatmul.bf16.vlgmr.msra.gmra.mxu3 %v415_v23 }
  0xfe   : > { %v388_v25 = vpop.f32.mrf.mxu0 }
  0xff   : > { %v389_v28 = vadd.f32 %v999_v34, %v388_v25 }
 0x101   : > { %v407_v31 = vmax.f32 %v389_v28, 0.0 }
 0x106   : > { %v390_v29 = vpop.f32.mrf.mxu0 }
 0x107   : > { %v391_v30 = vadd.f32 %v999_v34, %v390_v29 }
 0x109   : > { %v408_v32 = vmax.f32 %v391_v30, 0.0 }
 0x10b   : > { %v416_v33 = vpack.c.bf16 %v408_v32, %v407_v31 }
 0x10d   : > { %528 = vmatmul.bf16.gmra.mxu3 %v416_v33 }
 0x11a   : > { %v494_v35 = vpop.f32.mrf.mxu1 }
 0x11b   : > { %v495_v37 = vadd.f32 %v877_v36, %v494_v35 }
 0x11d   : > { %v534_v40 = vmax.f32 %v495_v37, 0.0 }
 0x122   : > { %v496_v38 = vpop.f32.mrf.mxu1 }
 0x123   : > { %v497_v39 = vadd.f32 %v877_v36, %v496_v38 }
 0x125   : > { %v535_v41 = vmax.f32 %v497_v39, 0.0 }
 0x127   : > { %v550_v42 = vpack.c.bf16 %v535_v41, %v534_v40 }
 0x129   : > { %634 = vmatmul.bf16.vlgmr.msra.gmra.mxu2 %v550_v42 }
 0x12a   : > { %v499_v43 = vpop.f32.mrf.mxu1 }
 0x12b   : > { %v500_v44 = vadd.f32 %v877_v36, %v499_v43 }
 0x12d   : > { %v536_v46 = vmax.f32 %v500_v44, 0.0 }
 0x132   : > { %v501_v45 = vpop.f32.mrf.mxu1 }
 0x133   : > { %v502_v34 = vadd.f32 %v877_v36, %v501_v45 }
 0x135   : > { %v537_v47 = vmax.f32 %v502_v34, 0.0 }
 0x137   : > { %v551_v48 = vpack.c.bf16 %v537_v47, %v536_v46 }
 0x139   : > { %639 = vmatmul.bf16.gmra.mxu2 %v551_v48 }
 0x13a   : > { %v504_v49 = vpop.f32.mrf.mxu1 }
 0x13b   : > { %v505_v50 = vadd.f32 %v877_v36, %v504_v49 }
 0x13d   : > { %v538_v53 = vmax.f32 %v505_v50, 0.0 }
 0x142   : > { %v506_v51 = vpop.f32.mrf.mxu1 }
 0x143   : > { %v507_v52 = vadd.f32 %v877_v36, %v506_v51 }
 0x145   : > { %v539_v54 = vmax.f32 %v507_v52, 0.0 }
 0x147   : > { %v552_v55 = vpack.c.bf16 %v539_v54, %v538_v53 }
 0x149   : > { %644 = vmatmul.bf16.gmra.mxu2 %v552_v55 }
 0x14a   : > { %v509_v56 = vpop.f32.mrf.mxu1 }
 0x14b   : > { %v510_v57 = vadd.f32 %v877_v36, %v509_v56 }
 0x14d   : > { %v540_v60 = vmax.f32 %v510_v57, 0.0 }
 0x152   : > { %v511_v58 = vpop.f32.mrf.mxu1 }
 0x153   : > { %v512_v59 = vadd.f32 %v877_v36, %v511_v58 }
 0x155   : > { %v541_v61 = vmax.f32 %v512_v59, 0.0 }
 0x157   : > { %v553_v62 = vpack.c.bf16 %v541_v61, %v540_v60 }
 0x159   : > { %649 = vmatmul.bf16.gmra.mxu2 %v553_v62 }
 0x15a   : > { %v514_v63 = vpop.f32.mrf.mxu1 }
 0x15b   : > { %v515_v0 = vadd.f32 %v877_v36, %v514_v63 }
 0x15d   : > { %v542_v3 = vmax.f32 %v515_v0, 0.0 }
 0x162   : > { %v516_v1 = vpop.f32.mrf.mxu1 }
 0x163   : > { %v517_v2 = vadd.f32 %v877_v36, %v516_v1 }
 0x165   : > { %v543_v4 = vmax.f32 %v517_v2, 0.0 }
 0x167   : > { %v554_v5 = vpack.c.bf16 %v543_v4, %v542_v3 }
 0x169   : > { %654 = vmatmul.bf16.gmra.mxu2 %v554_v5 }
 0x16a   : > { %v519_v6 = vpop.f32.mrf.mxu1 }
 0x16b   : > { %v520_v7 = vadd.f32 %v877_v36, %v519_v6 }
 0x16d   : > { %v544_v10 = vmax.f32 %v520_v7, 0.0 }
 0x172   : > { %v521_v8 = vpop.f32.mrf.mxu1 }
 0x173   : > { %v522_v9 = vadd.f32 %v877_v36, %v521_v8 }
 0x175   : > { %v545_v11 = vmax.f32 %v522_v9, 0.0 }
 0x177   : > { %v555_v12 = vpack.c.bf16 %v545_v11, %v544_v10 }
 0x179   : > { %659 = vmatmul.bf16.gmra.mxu2 %v555_v12 }
 0x180   : > { %v524_v13 = vpop.f32.mrf.mxu3 }
 0x181   : > { %v525_v14 = vadd.f32 %v877_v36, %v524_v13 }
 0x183   : > { %v546_v17 = vmax.f32 %v525_v14, 0.0 }
 0x188   : > { %v526_v15 = vpop.f32.mrf.mxu3 }
 0x189   : > { %v527_v16 = vadd.f32 %v877_v36, %v526_v15 }
 0x18b   : > { %v547_v18 = vmax.f32 %v527_v16, 0.0 }
 0x18d   : > { %v556_v19 = vpack.c.bf16 %v547_v18, %v546_v17 }
 0x18f   : > { %664 = vmatmul.bf16.vlgmr.msrb.gmra.mxu3 %v556_v19 }
 0x190   : > { %v529_v20 = vpop.f32.mrf.mxu3 }
 0x191   : > { %v530_v21 = vadd.f32 %v877_v36, %v529_v20 }
 0x193   : > { %v548_v24 = vmax.f32 %v530_v21, 0.0 }
 0x198   : > { %v531_v22 = vpop.f32.mrf.mxu3 }
 0x199   : > { %v532_v23 = vadd.f32 %v877_v36, %v531_v22 }
 0x19b   : > { %v549_v25 = vmax.f32 %v532_v23, 0.0 }
 0x19d   : > { %v557_v26 = vpack.c.bf16 %v549_v25, %v548_v24 }
 0x19f   : > { %669 = vmatmul.bf16.gmra.mxu3 %v557_v26 }
 0x1ac   : > { %v635_v28 = vpop.f32.mrf.mxu2 }
 0x1ad   : > { %v636_v29 = vadd.f32 %v878_v27, %v635_v28 }
 0x1af   : > { %676 = vst.msk [vmem:[%s1052_s10] sm:$0xff] %vm675_vm1, %v636_v29 }
 0x1b4   : > { %v637_v30 = vpop.f32.mrf.mxu2 }
 0x1b5   : > { %v638_v31 = vadd.f32 %v878_v27, %v637_v30 }
 0x1b7   : > { %677 = vst.msk [vmem:[%s1052_s10 + $0x8] sm:$0xff] %vm675_vm1, %v638_v31 }
 0x1bc   : > { %v640_v32 = vpop.f32.mrf.mxu2 }
 0x1bd   : > { %v641_v33 = vadd.f32 %v878_v27, %v640_v32 }
 0x1bf   : > { %678 = vst.msk [vmem:[%s1052_s10 + $0x10] sm:$0xff] %vm675_vm1, %v641_v33 }
 0x1c4   : > { %v642_v35 = vpop.f32.mrf.mxu2 }
 0x1c5   : > { %v643_v36 = vadd.f32 %v878_v27, %v642_v35 }
 0x1c7   : > { %679 = vst.msk [vmem:[%s1052_s10 + $0x18] sm:$0xff] %vm675_vm1, %v643_v36 }
 0x1cc   : > { %v645_v37 = vpop.f32.mrf.mxu2 }
 0x1cd   : > { %v646_v38 = vadd.f32 %v878_v27, %v645_v37 }
 0x1cf   : > { %680 = vst.msk [vmem:[%s1052_s10 + $0x20] sm:$0xff] %vm675_vm1, %v646_v38 }
 0x1d4   : > { %v647_v39 = vpop.f32.mrf.mxu2 }
 0x1d5   : > { %v648_v40 = vadd.f32 %v878_v27, %v647_v39 }
 0x1d7   : > { %681 = vst.msk [vmem:[%s1052_s10 + $0x28] sm:$0xff] %vm675_vm1, %v648_v40 }
 0x1dc   : > { %v650_v41 = vpop.f32.mrf.mxu2 }
 0x1dd   : > { %v651_v42 = vadd.f32 %v878_v27, %v650_v41 }
 0x1df   : > { %682 = vst.msk [vmem:[%s1052_s10 + $0x30] sm:$0xff] %vm675_vm1, %v651_v42 }
 0x1e4   : > { %v652_v43 = vpop.f32.mrf.mxu2 }
 0x1e5   : > { %v653_v44 = vadd.f32 %v878_v27, %v652_v43 }
 0x1e7   : > { %683 = vst.msk [vmem:[%s1052_s10 + $0x38] sm:$0xff] %vm675_vm1, %v653_v44 }
 0x1ec   : > { %v655_v45 = vpop.f32.mrf.mxu2 }
 0x1ed   : > { %v656_v34 = vadd.f32 %v878_v27, %v655_v45 }
 0x1ef   : > { %684 = vst.msk [vmem:[%s1052_s10 + $0x40] sm:$0xff] %vm675_vm1, %v656_v34 }
 0x1f4   : > { %v657_v46 = vpop.f32.mrf.mxu2 }
 0x1f5   : > { %v658_v47 = vadd.f32 %v878_v27, %v657_v46 }
 0x1f7   : > { %685 = vst.msk [vmem:[%s1052_s10 + $0x48] sm:$0xff] %vm675_vm1, %v658_v47 }
 0x1fc   : > { %v660_v48 = vpop.f32.mrf.mxu2 }
 0x1fd   : > { %v661_v49 = vadd.f32 %v878_v27, %v660_v48 }
 0x1ff   : > { %686 = vst.msk [vmem:[%s1052_s10 + $0x50] sm:$0xff] %vm675_vm1, %v661_v49 }
 0x204   : > { %v662_v50 = vpop.f32.mrf.mxu2 }
 0x205   : > { %v663_v51 = vadd.f32 %v878_v27, %v662_v50 }
 0x207   : > { %687 = vst.msk [vmem:[%s1052_s10 + $0x58] sm:$0xff] %vm675_vm1, %v663_v51 }
 0x212   : > { %v665_v52 = vpop.f32.mrf.mxu3 }
 0x213   : > { %v666_v53 = vadd.f32 %v878_v27, %v665_v52 }
 0x215   : > { %688 = vst.msk [vmem:[%s1052_s10 + $0x60] sm:$0xff] %vm675_vm1, %v666_v53 }
 0x21a   : > { %v667_v54 = vpop.f32.mrf.mxu3 }
 0x21b   : > { %v668_v55 = vadd.f32 %v878_v27, %v667_v54 }
 0x21d   : > { %689 = vst.msk [vmem:[%s1052_s10 + $0x68] sm:$0xff] %vm675_vm1, %v668_v55 }
 0x222   : > { %v670_v56 = vpop.f32.mrf.mxu3 }
 0x223   : > { %v671_v57 = vadd.f32 %v878_v27, %v670_v56 }
 0x225   : > { %690 = vst.msk [vmem:[%s1052_s10 + $0x70] sm:$0xff] %vm675_vm1, %v671_v57 }
 0x22a   : > { %v672_v58 = vpop.f32.mrf.mxu3 }
 0x22b   : > { %v673_v59 = vadd.f32 %v878_v27, %v672_v58 }
 0x22d   : > { %691 = vst.msk [vmem:[%s1052_s10 + $0x78] sm:$0xff] %vm675_vm1, %v673_v59 }
 0x22e PF: > { %s17_s24 = sadd.s32 1, %s885_s24  }
 0x22f   : > { %p14_p4 = scmp.ge.s32.totalorder %s17_s24, 4  }
 0x231   :  { %16 = sbr.rel (!%p14_p4) target bundleno = 1 (0x1), region = 78 }

</bundles_post_ra>
